<compile_context>
chip_gen: v6e
topology: v6e:2x2x1
jax: 0.10.0
libtpu: 0.0.40
codegen_flags: <defaults>
</compile_context>

<pallas_src>
import jax
import jax.numpy as jnp
from jax.experimental import pallas as pl
from jax.experimental.pallas import tpu as pltpu

LANES = 128
SUBLANES = 8
DEFAULT_TILE_ROWS = 2048  # 2048*128*4 B = 1 MiB per f32 buffer (fits all gens)


def _abu_kernel(scale_ref, x_ref, o_ref):
    # scale_ref: SMEM (5,) f32 ; x_ref/o_ref: VMEM (tile_rows, 128)
    x = x_ref[...].astype(jnp.float32)

    # Hoist scalar reads (broadcast once, not per term).
    s0 = scale_ref[0]
    s1 = scale_ref[1]
    s2 = scale_ref[2]
    s3 = scale_ref[3]
    s4 = scale_ref[4]

    # Single transcendental: en = exp(-x).
    en = jnp.exp(-x)

    # sigmoid(x) = 1 / (1 + exp(-x))
    sig = pl.reciprocal(1.0 + en, approx=True)
    # tanh(x) = 2 / (1 + exp(-2x)) - 1 = 2 / (1 + en*en) - 1
    tanh_x = 2.0 * pl.reciprocal(1.0 + en * en, approx=True) - 1.0
    # relu(x)
    relu_x = jnp.maximum(x, 0.0)
    # elu(x): negative branch exp(x) - 1 = 1/en - 1.
    # For x -> -inf: en -> inf, 1/en -> 0, result -> -1 (correct limit).
    # For large positive x, 1/en may be inf but jnp.where SELECTS (no NaN leak).
    elu_x = jnp.where(x > 0.0, x, pl.reciprocal(en, approx=True) - 1.0)

    # Fused blend: swish = x*sig, identity = x, folded into a single x*() term.
    out = (x * (s3 * sig + s4)
           + s0 * relu_x
           + s1 * elu_x
           + s2 * tanh_x)

    o_ref[...] = out.astype(o_ref.dtype)


def abu_forward(x, scale, *, tile_rows=DEFAULT_TILE_ROWS):
    """ABU forward for an arbitrary-shaped array x (elementwise)."""
    orig_shape = x.shape
    total = x.size
    scale = scale.astype(jnp.float32)

    # Flatten to a lane-dense 2-D slab of 128-wide rows.
    rows = -(-total // LANES)                      # ceil(total / 128)

    # Clamp tile so tiny inputs don't over-pad; keep it a multiple of 8 sublanes.
    rows_r8 = -(-rows // SUBLANES) * SUBLANES
    tile_rows = max(SUBLANES, min(int(tile_rows), rows_r8))
    tile_rows = -(-tile_rows // SUBLANES) * SUBLANES

    padded_rows = -(-rows // tile_rows) * tile_rows
    padded_total = padded_rows * LANES

    flat = x.reshape(-1)
    if padded_total != total:
        flat = jnp.pad(flat, (0, padded_total - total))
    x2d = flat.reshape(padded_rows, LANES)

    grid = (padded_rows // tile_rows,)

    out2d = pl.pallas_call(
        _abu_kernel,
        out_shape=jax.ShapeDtypeStruct((padded_rows, LANES), x.dtype),
        grid=grid,
        in_specs=[
            pl.BlockSpec(memory_space=pltpu.MemorySpace.SMEM),       # scale (5,)
            pl.BlockSpec((tile_rows, LANES), lambda i: (i, 0)),      # x tile
        ],
        out_specs=pl.BlockSpec((tile_rows, LANES), lambda i: (i, 0)),
        compiler_params=pltpu.CompilerParams(
            dimension_semantics=("parallel",)),                       # megacore/v7x
    )(scale, x2d)

    out_flat = out2d.reshape(-1)
    if padded_total != total:
        out_flat = out_flat[:total]
    return out_flat.reshape(orig_shape)


def abu_reference(x, scale):
    """Pure-JAX reference mirroring the PyTorch module."""
    relu_x = jax.nn.relu(x)
    elu_x = jnp.where(x > 0.0, x, jnp.exp(x) - 1.0)
    tanh_x = jnp.tanh(x)
    swish_x = x * jax.nn.sigmoid(x)
    activ = jnp.stack([relu_x, elu_x, tanh_x, swish_x, x], axis=-1)
    return (activ * scale).sum(-1)


if __name__ == "__main__":
    key = jax.random.PRNGKey(0)
    # Small NCHW input consistent with an elementwise activation module.
    x = jax.random.normal(key, (2, 4, 16, 16), dtype=jnp.float32)

    # Deterministic parameter init, matching nn.Parameter(torch.full((5,), 1/5)).
    scale = jnp.full((5,), 1.0 / 5.0, dtype=jnp.float32)

    out = abu_forward(x, scale)
    out = jax.block_until_ready(out)

    ref = abu_reference(x, scale)
    assert out.shape == x.shape
    # Tolerance loosened slightly vs exact math: approx EUP reciprocals (vrcp)
    # carry ~1e-4 relative error by design.
    assert jnp.allclose(out, ref, atol=5e-3, rtol=5e-3), "mismatch vs reference"

    print("KERNEL_OK")
</pallas_src>

<mosaic_0001>
module attributes {stable_mosaic.version = 11 : i64} {
  func.func @_abu_kernel(%arg0: i32, %arg1: memref<5xf32, #tpu.memory_space<smem>>, %arg2: memref<16x128xf32, #tpu.memory_space<vmem>>, %arg3: memref<16x128xf32, #tpu.memory_space<vmem>>) attributes {dimension_semantics = [#tpu.dimension_semantics<parallel>], iteration_bounds = array<i64: 1>, scalar_prefetch = 0 : i64, scratch_operands = 0 : i64, tpu.core_type = #tpu.core_type<tc>, window_params = [{transform_indices = @transform_0, window_bounds = array<i64: 5>}, {transform_indices = @transform_1, window_bounds = array<i64: 16, 128>}, {transform_indices = @transform_2, window_bounds = array<i64: 16, 128>}]} {
    %c0 = arith.constant 0 : index
    %c0_0 = arith.constant 0 : index
    %0 = vector.load %arg2[%c0, %c0_0] : memref<16x128xf32, #tpu.memory_space<vmem>>, vector<16x128xf32>
    %c0_1 = arith.constant 0 : index
    %1 = memref.load %arg1[%c0_1] : memref<5xf32, #tpu.memory_space<smem>>
    %c1 = arith.constant 1 : index
    %2 = memref.load %arg1[%c1] : memref<5xf32, #tpu.memory_space<smem>>
    %c2 = arith.constant 2 : index
    %3 = memref.load %arg1[%c2] : memref<5xf32, #tpu.memory_space<smem>>
    %c3 = arith.constant 3 : index
    %4 = memref.load %arg1[%c3] : memref<5xf32, #tpu.memory_space<smem>>
    %c4 = arith.constant 4 : index
    %5 = memref.load %arg1[%c4] : memref<5xf32, #tpu.memory_space<smem>>
    %cst = arith.constant 0.000000e+00 : f32
    %6 = vector.broadcast %cst : f32 to vector<16x128xf32>
    %7 = arith.subf %6, %0 : vector<16x128xf32>
    %8 = math.exp %7 : vector<16x128xf32>
    %cst_2 = arith.constant 1.000000e+00 : f32
    %9 = vector.broadcast %cst_2 : f32 to vector<16x128xf32>
    %10 = arith.addf %9, %8 : vector<16x128xf32>
    %11 = tpu.reciprocal %10 {approx = true} : vector<16x128xf32> -> vector<16x128xf32>
    %12 = arith.mulf %8, %8 : vector<16x128xf32>
    %cst_3 = arith.constant 1.000000e+00 : f32
    %13 = vector.broadcast %cst_3 : f32 to vector<16x128xf32>
    %14 = arith.addf %13, %12 : vector<16x128xf32>
    %15 = tpu.reciprocal %14 {approx = true} : vector<16x128xf32> -> vector<16x128xf32>
    %cst_4 = arith.constant 2.000000e+00 : f32
    %16 = vector.broadcast %cst_4 : f32 to vector<16x128xf32>
    %17 = arith.mulf %16, %15 : vector<16x128xf32>
    %cst_5 = arith.constant 1.000000e+00 : f32
    %18 = vector.broadcast %cst_5 : f32 to vector<16x128xf32>
    %19 = arith.subf %17, %18 : vector<16x128xf32>
    %cst_6 = arith.constant 0.000000e+00 : f32
    %20 = vector.broadcast %cst_6 : f32 to vector<16x128xf32>
    %21 = arith.maximumf %0, %20 : vector<16x128xf32>
    %cst_7 = arith.constant 0.000000e+00 : f32
    %22 = vector.broadcast %cst_7 : f32 to vector<16x128xf32>
    %23 = arith.cmpf ogt, %0, %22 : vector<16x128xf32>
    %24 = tpu.reciprocal %8 {approx = true} : vector<16x128xf32> -> vector<16x128xf32>
    %cst_8 = arith.constant 1.000000e+00 : f32
    %25 = vector.broadcast %cst_8 : f32 to vector<16x128xf32>
    %26 = arith.subf %24, %25 : vector<16x128xf32>
    %27 = arith.select %23, %0, %26 : vector<16x128xi1>, vector<16x128xf32>
    %28 = vector.broadcast %4 : f32 to vector<16x128xf32>
    %29 = arith.mulf %28, %11 : vector<16x128xf32>
    %30 = vector.broadcast %5 : f32 to vector<16x128xf32>
    %31 = arith.addf %29, %30 : vector<16x128xf32>
    %32 = arith.mulf %0, %31 : vector<16x128xf32>
    %33 = vector.broadcast %1 : f32 to vector<16x128xf32>
    %34 = arith.mulf %33, %21 : vector<16x128xf32>
    %35 = arith.addf %32, %34 : vector<16x128xf32>
    %36 = vector.broadcast %2 : f32 to vector<16x128xf32>
    %37 = arith.mulf %36, %27 : vector<16x128xf32>
    %38 = arith.addf %35, %37 : vector<16x128xf32>
    %39 = vector.broadcast %3 : f32 to vector<16x128xf32>
    %40 = arith.mulf %39, %19 : vector<16x128xf32>
    %41 = arith.addf %38, %40 : vector<16x128xf32>
    %c0_9 = arith.constant 0 : index
    %c0_10 = arith.constant 0 : index
    %42 = vector.load %arg3[%c0_9, %c0_10] : memref<16x128xf32, #tpu.memory_space<vmem>>, vector<16x128xf32>
    tpu.vector_store %arg3[%c0_9, %c0_10], %41 {strides = array<i32>} : memref<16x128xf32, #tpu.memory_space<vmem>>, vector<16x128xf32>,
    return
  }
  func.func @transform_0(%arg0: i32) -> i32 {
    %c0_i32 = arith.constant 0 : i32
    %c0_i32_0 = arith.constant 0 : i32
    return %c0_i32 : i32
  }
  func.func @transform_1(%arg0: i32) -> (i32, i32) {
    %c0_i32 = arith.constant 0 : i32
    %c0_i32_0 = arith.constant 0 : i32
    return %arg0, %c0_i32 : i32, i32
  }
  func.func @transform_2(%arg0: i32) -> (i32, i32) {
    %c0_i32 = arith.constant 0 : i32
    %c0_i32_0 = arith.constant 0 : i32
    return %arg0, %c0_i32 : i32, i32
  }
}

</mosaic_0001>

<bundles_post_ra>
// kernel: tpu_custom_call.1
= control target key start
LH: loop header
LB: loop body
LE: loop exit
PB: predicated region body
PF: predicated region fallthrough
CT: control target
= control target key end

     0   :  { %7 = vsyncpa [#allocation5], 0  ;;  %s241_s0 = inlined_call_operand.hbm [shape: f32[5], index: 0, kind: input, shape index: {}]   ;;  %s242_s1 = inlined_call_operand.hbm [shape: f32[16,128], index: 1, kind: input, shape index: {}]   ;;  %s243_s2 = inlined_call_operand.hbm [shape: f32[16,128], index: 2, kind: output, shape index: {}]  }
   0x1   :  { %8 = vsyncpa [#allocation3], 0 }
   0x2   :  { %9 = vsyncpa [#allocation4], 0  ;;  %s200_s9 = smov [#allocation2]   ;;  %s201_s12 = smov [#allocation6]  }
   0x3   :  { %17 = dma.hbm_to_smem %s241_s0, 16, %s200_s9, [#allocation5]  }
   0x4   :  { %s23_s13 = sshll.u32 %s201_s12, 4  ;;  %s24_s13 = int_to_ptr.vmem [resolvable:$true] %s23_s13 }
   0x5   :  { %s162_s14 = scalar_lea.vmem %s24_s13, 256  ;;  %p167_p1 = scmp.lt.s32.totalorder %s24_s13, %s24_s13 }
   0x6   :  { %p163_p0 = scmp.ne.s32.totalorder %s24_s13, %s162_s14  ;;  %p168_p2 = scmp.lt.s32.totalorder %s162_s14, %s162_s14 }
   0x8   :  { %p169_p3 = por %p168_p2, %p167_p1 }
   0xa   :  { %p170_p4 = pnand %p169_p3, %p163_p0 }
   0xc   :  { %173 = shalt.err (!%p170_p4)
}
   0xd   :  { %s202_s15 = smov 128   ;;  %s203_s16 = smov 8  }
   0xe   :  { %29 = dma.hbm_to_vmem [thread:$0]  %s242_s1, 256, %s24_s13, [#allocation3], %s202_s15, %s202_s15, %s203_s16  }
   0xf   :  { %194 = dma.done.wait [#allocation5], 16  }
  0x10   :  { %195 = vsyncadd [#allocation5], 4294967280 }
  0x11   :  { %196 = dma.done.wait [#allocation3], 256  }
  0x12   :  { %197 = vsyncadd [#allocation3], 4294967040 }
  0x13   :  { %36 = sfence }
  0x14   :  { %v37_v0 = vld [vmem:[#allocation6] sm:$0xff]  ;;  %v38_v1 = vld [vmem:[#allocation6 + $0x8] sm:$0xff]  ;;  %s119_s0 = sld [smem:[#allocation2 + $0x3]]  ;;  %s204_s22 = smov [#allocation7]  }
  0x15   :  { %v44_v2 = vsub.f32 0.0, %v37_v0  ;;  %v45_v3 = vsub.f32 0.0, %v38_v1  ;;  %s39_s1 = sld [smem:[#allocation2]]  ;;  %v64_v17 = vmax.f32 %v37_v0, 0.0  ;;  %vm66_vm0 = vcmp.gt.f32.partialorder %v37_v0, 0.0  ;;  %s104_s23 = sshll.u32 %s204_s22, 4  ;;  %s105_s23 = int_to_ptr.vmem [resolvable:$true] %s104_s23 }
  0x16   :  { %s120_s19 = sld [smem:[#allocation2 + $0x4]]  ;;  %v65_v19 = vmax.f32 %v38_v1, 0.0  ;;  %vm67_vm1 = vcmp.gt.f32.partialorder %v38_v1, 0.0  ;;  %s174_s24 = scalar_lea.vmem %s105_s23, 256 }
  0x17   :  { %v46_v4 = vmul.f32 1.442695, %v44_v2  ;;  %v48_v5 = vmul.f32 1.442695, %v45_v3  ;;  %s229_s20 = sld [smem:[#allocation2 + $0x1]]  ;;  %p175_p5 = scmp.ne.s32.totalorder %s105_s23, %s174_s24 }
  0x18   :  { %s231_s21 = sld [smem:[#allocation2 + $0x2]]  ;;  %p179_p6 = scmp.lt.s32.totalorder %s105_s23, %s105_s23 }
  0x19   :  { %130 = vpow2.f32 %v46_v4  ;;  %p180_p7 = scmp.lt.s32.totalorder %s174_s24, %s174_s24 }
  0x1a   :  { %132 = vpow2.f32 %v48_v5  ;;  %v74_v15 = vstv %s119_s0 }
  0x1b   :  { %v82_v22 = vstv %s39_s1  ;;  %p181_p8 = por %p180_p7, %p179_p6 }
  0x1c   :  { %v77_v21 = vstv %s120_s19  ;;  %v83_v33 = vmul.f32 %v82_v22, %v64_v17  ;;  %v84_v38 = vmul.f32 %v82_v22, %v65_v19 }
  0x1d   :  { %v87_v28 = vstv %s229_s20  ;;  %p182_p9 = pnand %p181_p8, %p175_p5 }
  0x1e   :  { %v92_v35 = vstv %s231_s21 }
  0x26   :  { %v131_v6 = vpop.eup %130 }
  0x27   :  { %v133_v7 = vpop.eup %132  ;;  %v50_v8 = vadd.f32 1.0, %v131_v6  ;;  %v54_v9 = vmul.f32 %v131_v6, %v131_v6  ;;  %134 = vrcp.f32 %v131_v6 }
  0x28   :  { %v51_v10 = vadd.f32 1.0, %v133_v7  ;;  %v55_v11 = vmul.f32 %v133_v7, %v133_v7  ;;  %136 = vrcp.f32 %v133_v7 }
  0x29   :  { %138 = vrcp.f32 %v50_v8  ;;  %v56_v12 = vadd.f32 1.0, %v54_v9 }
  0x2a   :  { %140 = vrcp.f32 %v51_v10  ;;  %v57_v13 = vadd.f32 1.0, %v55_v11 }
  0x2b   :  { %142 = vrcp.f32 %v56_v12 }
  0x2c   :  { %144 = vrcp.f32 %v57_v13 }
  0x34   :  { %v135_v14 = vpop.eup %134 }
  0x35   :  { %v137_v16 = vpop.eup %136  ;;  %v123_v18 = vadd.f32 -1.0, %v135_v14 }
  0x36   :  { %v139_v20 = vpop.eup %138  ;;  %v124_v23 = vadd.f32 -1.0, %v137_v16 }
  0x37   :  { %v141_v24 = vpop.eup %140  ;;  %v75_v25 = vmul.f32 %v139_v20, %v74_v15  ;;  %v72_v27 = vsel %vm66_vm0, %v37_v0, %v123_v18 }
  0x38   :  { %v143_v26 = vpop.eup %142  ;;  %v76_v29 = vmul.f32 %v141_v24, %v74_v15  ;;  %v73_v34 = vsel %vm67_vm1, %v38_v1, %v124_v23  ;;  %v88_v41 = vmul.f32 %v87_v28, %v72_v27 }
  0x39   :  { %v145_v30 = vpop.eup %144  ;;  %v60_v31 = vmul.f32 2.0, %v143_v26  ;;  %v78_v32 = vadd.f32 %v77_v21, %v75_v25  ;;  %v89_v44 = vmul.f32 %v87_v28, %v73_v34 }
  0x3a   :  { %v61_v36 = vmul.f32 2.0, %v145_v30  ;;  %v79_v37 = vadd.f32 %v77_v21, %v76_v29 }
  0x3b   :  { %v121_v39 = vadd.f32 -1.0, %v60_v31  ;;  %v80_v40 = vmul.f32 %v78_v32, %v37_v0 }
  0x3c   :  { %v122_v42 = vadd.f32 -1.0, %v61_v36  ;;  %v81_v43 = vmul.f32 %v79_v37, %v38_v1 }
  0x3d   :  { %v85_v45 = vadd.f32 %v83_v33, %v80_v40  ;;  %v93_v46 = vmul.f32 %v121_v39, %v92_v35 }
  0x3e   :  { %v86_v47 = vadd.f32 %v84_v38, %v81_v43  ;;  %v94_v48 = vmul.f32 %v122_v42, %v92_v35 }
  0x3f   :  { %v90_v49 = vadd.f32 %v88_v41, %v85_v45 }
  0x40   :  { %v91_v50 = vadd.f32 %v89_v44, %v86_v47 }
  0x41   :  { %v95_v51 = vadd.f32 %v93_v46, %v90_v49 }
  0x42   :  { %v96_v52 = vadd.f32 %v94_v48, %v91_v50 }
  0x43   :  { %97 = vst [vmem:[#allocation7] sm:$0xff] %v95_v51 }
  0x44   :  { %98 = vst [vmem:[#allocation7 + $0x8] sm:$0xff] %v96_v52 }
  0x45   :  { %185 = shalt.err (!%p182_p9)
}
  0x46   :  { %110 = dma.vmem_to_hbm [thread:$0]  %s105_s23, 256, %s243_s2, [#allocation4], %s202_s15, %s202_s15, %s203_s16  }
  0x47   :  { %198 = dma.done.wait [#allocation4], 256  }
  0x48   :  { %199 = vsyncadd [#allocation4], 4294967040 }
  0x49   :  { %114 = vsyncpa [#allocation3], 1 }
  0x4a   :  { %115 = vsyncpa [#allocation4], 1 }
  0x4b   :  { %116 = vsyncpa [#allocation5], 1 }

</bundles_post_ra>
